<compile_context>
chip_gen: v5e
topology: v5e:2x2
jax: 0.10.0
libtpu: 0.0.40
codegen_flags: <defaults>
</compile_context>

<pallas_src>
import jax
import jax.numpy as jnp
from jax.experimental import pallas as pl
from jax.experimental.pallas import tpu as pltpu

LANE = 128


def _round_up(x, m):
    return ((x + m - 1) // m) * m


# ---------------------------------------------------------------------------
# Kernel
# ---------------------------------------------------------------------------
def _autoenc_kernel(idx_ref, t1_ref, b1_ref, w2_ref, b2_ref, out_ref):
    # idx_ref: (TM, 1)  int32  -- token ids for this tile of rows (pipelined)
    # t1_ref : (Vp, Cp) bf16   -- folded table  emb @ W1  (single VMEM copy)
    # b1_ref : (1, Cp)  f32    -- encoder bias  (zero-padded)
    # w2_ref : (Cp, Ep) bf16   -- decoder weight (zero-padded)
    # b2_ref : (1, Ep)  f32    -- decoder bias  (zero-padded)
    # out_ref: (TM, Ep)        -- lane-dense output tile
    idx = idx_ref[...]                                     # (TM, 1) int32
    tm = idx.shape[0]
    vp = t1_ref.shape[0]

    # Embedding lookup as one-hot matmul (MXU-friendly gather; small-V path).
    vocab_iota = jax.lax.broadcasted_iota(jnp.int32, (tm, vp), 1)
    onehot = (vocab_iota == idx).astype(jnp.bfloat16)      # (TM, Vp); exact 0/1

    # Fused embedding + encoder: relu(onehot @ (emb @ W1) + b1), f32 accum.
    h = jnp.dot(onehot, t1_ref[...],
                preferred_element_type=jnp.float32)        # (TM, Cp) f32
    h = jnp.maximum(h + b1_ref[...], 0.0)

    # Decoder: relu(h @ W2 + b2), bf16 operands, f32 accum.
    y = jnp.dot(h.astype(jnp.bfloat16), w2_ref[...],
                preferred_element_type=jnp.float32)        # (TM, Ep) f32
    y = jnp.maximum(y + b2_ref[...], 0.0)

    out_ref[...] = y.astype(out_ref.dtype)


# ---------------------------------------------------------------------------
# One-time parameter preprocessing (hoisted out of the per-call forward)
# ---------------------------------------------------------------------------
def prepare_params(emb, w1, b1, w2, b2):
    """Fold the encoder weight into the embedding table and build zero-padded
    bf16 MXU operands / f32 biases.  Call once; reuse across forward calls."""
    V, E = emb.shape
    C = w1.shape[1]
    Vp, Cp, Ep = _round_up(V, LANE), _round_up(C, LANE), _round_up(E, LANE)

    table1 = emb.astype(jnp.float32) @ w1.astype(jnp.float32)          # (V, C)

    table1_p = jnp.zeros((Vp, Cp), jnp.bfloat16)
    table1_p = table1_p.at[:V, :C].set(table1.astype(jnp.bfloat16))
    w2_p = jnp.zeros((Cp, Ep), jnp.bfloat16)
    w2_p = w2_p.at[:C, :E].set(w2.astype(jnp.bfloat16))
    b1_p = jnp.zeros((1, Cp), jnp.float32).at[0, :C].set(b1.astype(jnp.float32))
    b2_p = jnp.zeros((1, Ep), jnp.float32).at[0, :E].set(b2.astype(jnp.float32))

    return {"table1": table1_p, "b1": b1_p, "w2": w2_p, "b2": b2_p,
            "V": V, "E": E, "C": C}


def _vmem_limit_bytes(tm, Vp, Cp, Ep, out_itemsize):
    # Single-buffered weights + f32 biases.
    weights = Vp * Cp * 2 + Cp * Ep * 2 + (Cp + Ep) * 4
    # Double-buffered pipelined tiles (idx lane-pads (tm,1)->(tm,128) in VMEM).
    idx_tiles = 2 * tm * LANE * 4
    out_tiles = 2 * tm * Ep * out_itemsize
    # In-kernel intermediates: iota (i32) + onehot (bf16), h (f32), y (f32).
    scratch = tm * Vp * (4 + 2) + tm * Cp * 4 + tm * Ep * 4
    total = int((weights + idx_tiles + out_tiles + scratch) * 2) + (2 << 20)
    return max(4 << 20, min(total, 64 << 20))   # floor 4 MiB, v7x-safe ceiling


# ---------------------------------------------------------------------------
# Forward
# ---------------------------------------------------------------------------
def embedding_autoencoder_forward(input_x, params, *, tm_cap=512,
                                  out_dtype=jnp.float32):
    """input_x: (B, S) int ids -> (B, S, embedding_dim) in out_dtype."""
    B, S = input_x.shape
    N = B * S
    E = params["E"]
    t1_p, b1_p, w2_p, b2_p = (params["table1"], params["b1"],
                              params["w2"], params["b2"])
    Vp, Cp = t1_p.shape
    Ep = w2_p.shape[1]

    # Row tile: large enough to amortize per-step pipeline overhead, but
    # capped at ceil(N/2) so the "parallel" grid has >= 2 steps (v7x megacore).
    tm = min(tm_cap, max(8, _round_up((N + 1) // 2, 8)))
    Np = _round_up(N, tm)

    idx = jnp.zeros((Np, 1), jnp.int32)
    idx = idx.at[:N, 0].set(input_x.reshape(N).astype(jnp.int32))

    # Single VMEM-resident copy of each weight operand (no double-buffering).
    weight_spec = pl.BlockSpec(memory_space=pltpu.MemorySpace.VMEM)

    out = pl.pallas_call(
        _autoenc_kernel,
        out_shape=jax.ShapeDtypeStruct((Np, Ep), out_dtype),
        grid_spec=pltpu.PrefetchScalarGridSpec(
            num_scalar_prefetch=0,
            grid=(Np // tm,),
            in_specs=[
                pl.BlockSpec((tm, 1), lambda i: (i, 0)),   # token-id tile
                weight_spec,                               # folded table (bf16)
                weight_spec,                               # encoder bias (f32)
                weight_spec,                               # decoder weight (bf16)
                weight_spec,                               # decoder bias (f32)
            ],
            out_specs=pl.BlockSpec((tm, Ep), lambda i: (i, 0)),
        ),
        compiler_params=pltpu.CompilerParams(
            dimension_semantics=("parallel",),
            vmem_limit_bytes=_vmem_limit_bytes(
                tm, Vp, Cp, Ep, jnp.dtype(out_dtype).itemsize),
        ),
    )(idx, t1_p, b1_p, w2_p, b2_p)

    # Strip row/column padding and restore (B, S, E).
    return out[:N, :E].reshape(B, S, E)


# ---------------------------------------------------------------------------
# Pure-JAX reference
# ---------------------------------------------------------------------------
def _reference_forward(input_x, emb, w1, b1, w2, b2):
    embedded = emb[input_x]                                   # (B, S, E)
    encoded = jnp.maximum(embedded @ w1 + b1, 0.0)            # (B, S, C)
    decoded = jnp.maximum(encoded @ w2 + b2, 0.0)             # (B, S, E)
    return decoded


if __name__ == "__main__":
    # Module hyper-parameters (small, consistent with the forward pass).
    vocab_size = 64
    embedding_dim = 32
    compressed_dim = 16
    batch, seq = 2, 8

    key = jax.random.PRNGKey(0)
    k_emb, k_w1, k_b1, k_w2, k_b2, k_x = jax.random.split(key, 6)

    # Deterministic parameter init (shapes per nn.Embedding / nn.Linear).
    emb = jax.random.normal(k_emb, (vocab_size, embedding_dim), jnp.float32)
    lim1 = 1.0 / jnp.sqrt(embedding_dim)
    w1 = jax.random.uniform(k_w1, (embedding_dim, compressed_dim),
                            jnp.float32, -lim1, lim1)
    b1 = jax.random.uniform(k_b1, (compressed_dim,), jnp.float32, -lim1, lim1)
    lim2 = 1.0 / jnp.sqrt(compressed_dim)
    w2 = jax.random.uniform(k_w2, (compressed_dim, embedding_dim),
                            jnp.float32, -lim2, lim2)
    b2 = jax.random.uniform(k_b2, (embedding_dim,), jnp.float32, -lim2, lim2)

    # Integer token ids, shape (batch, seq).
    input_x = jax.random.randint(k_x, (batch, seq), 0, vocab_size, jnp.int32)

    # One-time preprocessing (fold + pad), then a jitted per-call forward.
    params = jax.block_until_ready(prepare_params(emb, w1, b1, w2, b2))
    forward = jax.jit(lambda ids: embedding_autoencoder_forward(ids, params))

    out = jax.block_until_ready(forward(input_x))

    ref = _reference_forward(input_x, emb, w1, b1, w2, b2)
    assert out.shape == (batch, seq, embedding_dim)
    # bf16 MXU operands with f32 accumulation -> relaxed tolerance vs f32 ref.
    assert jnp.allclose(out, ref, atol=2e-2, rtol=2e-2), "mismatch vs reference"

    print("KERNEL_OK")
</pallas_src>

<mosaic_0001>
module attributes {stable_mosaic.version = 11 : i64} {
  func.func @_autoenc_kernel(%arg0: i32, %arg1: memref<8x1xi32, #tpu.memory_space<vmem>>, %arg2: memref<128x128xbf16, #tpu.memory_space<vmem>>, %arg3: memref<1x128xf32, #tpu.memory_space<vmem>>, %arg4: memref<128x128xbf16, #tpu.memory_space<vmem>>, %arg5: memref<1x128xf32, #tpu.memory_space<vmem>>, %arg6: memref<8x128xf32, #tpu.memory_space<vmem>>) attributes {dimension_semantics = [#tpu.dimension_semantics<parallel>], iteration_bounds = array<i64: 2>, scalar_prefetch = 0 : i64, scratch_operands = 0 : i64, tpu.core_type = #tpu.core_type<tc>, window_params = [{transform_indices = @transform_0, window_bounds = array<i64: 8, 1>}, {pipeline_mode = #tpu.pipeline_mode<synchronous>, transform_indices = @transform_1, window_bounds = array<i64: 128, 128>}, {pipeline_mode = #tpu.pipeline_mode<synchronous>, transform_indices = @transform_2, window_bounds = array<i64: 1, 128>}, {pipeline_mode = #tpu.pipeline_mode<synchronous>, transform_indices = @transform_3, window_bounds = array<i64: 128, 128>}, {pipeline_mode = #tpu.pipeline_mode<synchronous>, transform_indices = @transform_4, window_bounds = array<i64: 1, 128>}, {transform_indices = @transform_5, window_bounds = array<i64: 8, 128>}]} {
    %c0 = arith.constant 0 : index
    %c0_0 = arith.constant 0 : index
    %0 = vector.load %arg1[%c0, %c0_0] : memref<8x1xi32, #tpu.memory_space<vmem>>, vector<8x1xi32>
    %1 = tpu.iota {dimensions = array<i32: 1>} : vector<8x128xi32>
    %2 = vector.broadcast %0 : vector<8x1xi32> to vector<8x128xi32>
    %3 = arith.cmpi eq, %1, %2 : vector<8x128xi32>
    %4 = arith.extui %3 : vector<8x128xi1> to vector<8x128xi32>
    %5 = arith.sitofp %4 : vector<8x128xi32> to vector<8x128xf32>
    %6 = arith.truncf %5 : vector<8x128xf32> to vector<8x128xbf16>
    %c0_1 = arith.constant 0 : index
    %c0_2 = arith.constant 0 : index
    %7 = vector.load %arg2[%c0_1, %c0_2] : memref<128x128xbf16, #tpu.memory_space<vmem>>, vector<128x128xbf16>
    %cst = arith.constant dense<0.000000e+00> : vector<8x128xf32>
    %8 = tpu.matmul %6, %7, %cst {dimension_numbers = #tpu.dot_dimension_numbers<[1], [0], [0], [1], [0, 0, 1, 1], [], []>} : vector<8x128xbf16>, vector<128x128xbf16>, vector<8x128xf32> -> vector<8x128xf32>
    %c0_3 = arith.constant 0 : index
    %c0_4 = arith.constant 0 : index
    %9 = vector.load %arg3[%c0_3, %c0_4] : memref<1x128xf32, #tpu.memory_space<vmem>>, vector<1x128xf32>
    %10 = vector.broadcast %9 : vector<1x128xf32> to vector<8x128xf32>
    %11 = arith.addf %8, %10 : vector<8x128xf32>
    %cst_5 = arith.constant 0.000000e+00 : f32
    %12 = vector.broadcast %cst_5 : f32 to vector<8x128xf32>
    %13 = arith.maximumf %11, %12 : vector<8x128xf32>
    %14 = arith.truncf %13 : vector<8x128xf32> to vector<8x128xbf16>
    %c0_6 = arith.constant 0 : index
    %c0_7 = arith.constant 0 : index
    %15 = vector.load %arg4[%c0_6, %c0_7] : memref<128x128xbf16, #tpu.memory_space<vmem>>, vector<128x128xbf16>
    %cst_8 = arith.constant dense<0.000000e+00> : vector<8x128xf32>
    %16 = tpu.matmul %14, %15, %cst_8 {dimension_numbers = #tpu.dot_dimension_numbers<[1], [0], [0], [1], [0, 0, 1, 1], [], []>} : vector<8x128xbf16>, vector<128x128xbf16>, vector<8x128xf32> -> vector<8x128xf32>
    %c0_9 = arith.constant 0 : index
    %c0_10 = arith.constant 0 : index
    %17 = vector.load %arg5[%c0_9, %c0_10] : memref<1x128xf32, #tpu.memory_space<vmem>>, vector<1x128xf32>
    %18 = vector.broadcast %17 : vector<1x128xf32> to vector<8x128xf32>
    %19 = arith.addf %16, %18 : vector<8x128xf32>
    %cst_11 = arith.constant 0.000000e+00 : f32
    %20 = vector.broadcast %cst_11 : f32 to vector<8x128xf32>
    %21 = arith.maximumf %19, %20 : vector<8x128xf32>
    %c0_12 = arith.constant 0 : index
    %c0_13 = arith.constant 0 : index
    %22 = vector.load %arg6[%c0_12, %c0_13] : memref<8x128xf32, #tpu.memory_space<vmem>>, vector<8x128xf32>
    tpu.vector_store %arg6[%c0_12, %c0_13], %21 {strides = array<i32>} : memref<8x128xf32, #tpu.memory_space<vmem>>, vector<8x128xf32>,
    return
  }
  func.func @transform_0(%arg0: i32) -> (i32, i32) {
    %c0_i32 = arith.constant 0 : i32
    %c0_i32_0 = arith.constant 0 : i32
    return %arg0, %c0_i32 : i32, i32
  }
  func.func @transform_1(%arg0: i32) -> (i32, i32) {
    %c0_i32 = arith.constant 0 : i32
    %c0_i32_0 = arith.constant 0 : i32
    %c0_i32_1 = arith.constant 0 : i32
    return %c0_i32, %c0_i32_0 : i32, i32
  }
  func.func @transform_2(%arg0: i32) -> (i32, i32) {
    %c0_i32 = arith.constant 0 : i32
    %c0_i32_0 = arith.constant 0 : i32
    %c0_i32_1 = arith.constant 0 : i32
    return %c0_i32, %c0_i32_0 : i32, i32
  }
  func.func @transform_3(%arg0: i32) -> (i32, i32) {
    %c0_i32 = arith.constant 0 : i32
    %c0_i32_0 = arith.constant 0 : i32
    %c0_i32_1 = arith.constant 0 : i32
    return %c0_i32, %c0_i32_0 : i32, i32
  }
  func.func @transform_4(%arg0: i32) -> (i32, i32) {
    %c0_i32 = arith.constant 0 : i32
    %c0_i32_0 = arith.constant 0 : i32
    %c0_i32_1 = arith.constant 0 : i32
    return %c0_i32, %c0_i32_0 : i32, i32
  }
  func.func @transform_5(%arg0: i32) -> (i32, i32) {
    %c0_i32 = arith.constant 0 : i32
    %c0_i32_0 = arith.constant 0 : i32
    return %arg0, %c0_i32 : i32, i32
  }
}

</mosaic_0001>

<bundles_post_ra>
// kernel: _lambda_.1
= control target key start
LH: loop header
LB: loop body
LE: loop exit
PB: predicated region body
PF: predicated region fallthrough
CT: control target
= control target key end

     0   :  { %10 = vsyncpa [#allocation3], 0  ;;  %s798_s0 = inlined_call_operand.vmem [shape: s32[16,1], index: 0, kind: input, shape index: {}]   ;;  %s799_s1 = inlined_call_operand.hbm [shape: bf16[128,128], index: 1, kind: input, shape index: {}]   ;;  %s800_s2 = inlined_call_operand.vmem [shape: f32[1,128], index: 2, kind: input, shape index: {}]   ;;  %s801_s3 = inlined_call_operand.hbm [shape: bf16[128,128], index: 3, kind: input, shape index: {}]   ;;  %s802_s4 = inlined_call_operand.vmem [shape: f32[1,128], index: 4, kind: input, shape index: {}]   ;;  %s803_s5 = inlined_call_operand.vmem [shape: f32[16,128], index: 5, kind: output, shape index: {}]  }
   0x1   :  { %11 = vsyncpa [#allocation5], 0  ;;  %s749_s18 = smov 0  }
   0x2 LB: > { %s169_s21 = sshll.u32 %s799_s1, 4  ;;  %s505_s22 = sadd.s32 4294967295, %s711_s18   ;;  %s711_s18 = sphi %s749_s18, %s17_s18   ;;  %s170_s21 = int_to_ptr.hbm [resolvable:$true] %s169_s21 }
   0x3   : > { %p507_p0 = scmp.ge.s32.totalorder %s711_s18, 1  ;;  %p158_p1 = scmp.lt.s32.totalorder %s711_s18, 3 }
   0x4   : > { %p616_p2 = scmp.eq.s32.totalorder %s505_s22, 0  ;;  %s713_s24 = smov [#allocation2]  }
   0x5   : > { %p760_p3 = pnand %p507_p0, %p158_p1  ;;  %s171_s25 = sshll.u32 %s713_s24, 4  ;;  %s172_s25 = int_to_ptr.vmem [resolvable:$true] %s171_s25 }
   0x6   : > { %s186_s28 = sshll.u32 %s801_s3, 4  ;;  %s714_s29 = smov [#allocation4]   ;;  %s187_s28 = int_to_ptr.hbm [resolvable:$true] %s186_s28 }
   0x7   : > { %p609_p4 = pneg %p760_p3  ;;  %s188_s30 = sshll.u32 %s714_s29, 4  ;;  %s189_s30 = int_to_ptr.vmem [resolvable:$true] %s188_s30 }
   0x8   : > { %s715_s6 = smov 64   ;;  %s716_s7 = smov 4  }
   0x9   : > { %p610_p5 = pnand %p616_p2, %p609_p4  ;;  %214 = sbr.rel (%p760_p3) target bundleno = 406 (0x196), region = 40 }
   0xb   : > { %612 = dma.hbm_to_vmem [thread:$0]  (!%p610_p5), %s170_s21, 1024, %s172_s25, [#allocation3], %s715_s6, %s715_s6, %s716_s7  }
   0xc   : > { %615 = dma.hbm_to_vmem [thread:$0]  (!%p610_p5), %s187_s28, 1024, %s189_s30, [#allocation5], %s715_s6, %s715_s6, %s716_s7  }
   0xe   : > { %702 = dma.done.wait (%p616_p2), [#allocation3], 1024  }
   0xf   : > { %704 = vsyncadd (%p616_p2), [#allocation3], 4294966272 }
  0x10   : > { %706 = dma.done.wait (%p616_p2), [#allocation5], 1024  }
  0x11   : > { %708 = vsyncadd (%p616_p2), [#allocation5], 4294966272  ;;  %p246_p6 = scmp.lt.s32.totalorder %s505_s22, 1  ;;  %v717_v0 = vmov 0   ;;  %v592_v2 = vld [vmem:[#allocation2 + $0x38] sm:$0xff]  ;;  %v591_v3 = vld [vmem:[#allocation2 + $0x30] sm:$0xff]  ;;  %v255_v16 = vlaneseq }
  0x12   : > { %634 = vset.pattern.permute.xlu0 %v717_v0  ;;  %332 = vmatpush.bf16.msra.mxu0 %v592_v2  ;;  %v590_v4 = vld [vmem:[#allocation2 + $0x28] sm:$0xff]  ;;  %v589_v5 = vld [vmem:[#allocation2 + $0x20] sm:$0xff]  ;;  %v588_v6 = vld [vmem:[#allocation2 + $0x18] sm:$0xff]  ;;  %v718_v19 = vmov 1.0|1.0  }
  0x13   : > { %s806_s22 = smov (!%p246_p6, %s505_s22), 1  ;;  %v587_v7 = vld [vmem:[#allocation2 + $0x10] sm:$0xff]  ;;  %v586_v8 = vld [vmem:[#allocation2 + $0x8] sm:$0xff]  ;;  %v585_v9 = vld [vmem:[#allocation2] sm:$0xff]  ;;  %v256_v17 = vand.u32 127, %v255_v16 }
  0x14   : > { %s514_s8 = sshll.u32 %s806_s22, 3  ;;  %v600_v10 = vld [vmem:[#allocation4 + $0x38] sm:$0xff]  ;;  %v599_v11 = vld [vmem:[#allocation4 + $0x30] sm:$0xff]  ;;  %v598_v12 = vld [vmem:[#allocation4 + $0x28] sm:$0xff] }
  0x15   : > { %s249_s11 = scalar_lea.vmem %s798_s0, %s514_s8  ;;  %415 = vmatpush.bf16.msra.mxu1 %v600_v10  ;;  %v597_v13 = vld [vmem:[#allocation4 + $0x20] sm:$0xff]  ;;  %v596_v14 = vld [vmem:[#allocation4 + $0x18] sm:$0xff]  ;;  %v595_v15 = vld [vmem:[#allocation4 + $0x10] sm:$0xff]  ;;  %s253_s19 = scalar_lea.vmem %s803_s5, %s514_s8 }
  0x16   : > { %v254_v1 = vld [vmem:[%s249_s11] sm:$0xff]  ;;  %333 = vmatpush.bf16.msra.mxu0 %v591_v3  ;;  %v594_v20 = vld [vmem:[#allocation4 + $0x8] sm:$0xff] }
  0x17   : > { %258 = vperm.xlu0 %634, %v254_v1   ;;  %v593_v21 = vld [vmem:[#allocation4] sm:$0xff] }
  0x18   : > { %v635_v22 = vld [vmem:[%s800_s2] ss:$0 sm:$0xff] }
  0x19   : > { %416 = vmatpush.bf16.msra.mxu1 %v599_v11  ;;  %v636_v28 = vld [vmem:[%s802_s4] ss:$0 sm:$0xff] }
  0x1a   : > { %334 = vmatpush.bf16.msra.mxu0 %v590_v4 }
  0x1d   : > { %417 = vmatpush.bf16.msra.mxu1 %v598_v12 }
  0x1e   : > { %335 = vmatpush.bf16.msra.mxu0 %v589_v5 }
  0x21   : > { %418 = vmatpush.bf16.msra.mxu1 %v597_v13 }
  0x22   : > { %336 = vmatpush.bf16.msra.mxu0 %v588_v6 }
  0x25   : > { %419 = vmatpush.bf16.msra.mxu1 %v596_v14 }
  0x26   : > { %337 = vmatpush.bf16.msra.mxu0 %v587_v7 }
  0x29   : > { %420 = vmatpush.bf16.msra.mxu1 %v595_v15 }
  0x2a   : > { %338 = vmatpush.bf16.msra.mxu0 %v586_v8 }
  0x2d   : > { %421 = vmatpush.bf16.msra.mxu1 %v594_v20 }
  0x2e   : > { %339 = vmatpush.bf16.msra.mxu0 %v585_v9 }
  0x31   : > { %422 = vmatpush.bf16.msra.mxu1 %v593_v21 }
  0x89   : > { %v259_v18 = vpop.permute.xlu0 %258 }
  0x8a   : > { %vm260_vm0 = vcmp.eq.s32.totalorder %v256_v17, %v259_v18 }
  0x8b   : > { %vm549_vm1 = vmpackc.low %vm260_vm0, %vm260_vm0 }
  0x8c   : > { %550 = vmatmul.msk.bf16.vlgmr.msra.gmra.mxu0 %vm549_vm1, %v718_v19 }
 0x109   : > { %v341_v23 = vpop.f32.mrf.mxu0 }
 0x10a   : > { %v342_v24 = vadd.f32 %v635_v22, %v341_v23 }
 0x10c   : > { %v345_v25 = vmax.f32 %v342_v24, 0.0 }
 0x10e   : > { %v346_v26 = vpack.c.bf16 %v345_v25, %v345_v25 }
 0x110   : > { %423 = vmatmul.bf16.vlgmr.msra.gmra.mxu1 %v346_v26 }
 0x111   : > { %v343_v27 = vpop.f32.mrf.mxu0 }
 0x18d   : > { %v424_v29 = vpop.f32.mrf.mxu1 }
 0x18e   : > { %v425_v30 = vadd.f32 %v636_v28, %v424_v29 }
 0x190   : > { %v428_v31 = vmax.f32 %v425_v30, 0.0 }
 0x192   : > { %429 = vst [vmem:[%s253_s19] sm:$0xff] %v428_v31 }
 0x195   : > { %v426_v32 = vpop.f32.mrf.mxu1 }
 0x196 PF: > { %s17_s18 = sadd.s32 1, %s711_s18  }
 0x197   : > { %p14_p7 = scmp.ge.s32.totalorder %s17_s18, 4  }
 0x199   :  { %16 = sbr.rel (!%p14_p7) target bundleno = 2 (0x2), region = 79 }
 0x19e   :  { %449 = vsyncpa [#allocation3], 1 }
 0x19f   :  { %451 = vsyncpa [#allocation3 + $0x1], 1 }
 0x1a0   :  { %452 = vsyncpa [#allocation5], 1 }

</bundles_post_ra>
